<compile_context>
chip_gen: v5e
topology: v5e:2x2
jax: 0.10.0
libtpu: 0.0.40
codegen_flags: <defaults>
</compile_context>

<pallas_src>
import jax
import jax.numpy as jnp
from jax import lax
from jax.experimental import pallas as pl
from jax.experimental.pallas import tpu as pltpu

LANE = 128
TM_CAP = 2048          # max output-pixel (lane) tile per grid step
EPS = 1e-5             # BatchNorm2d default eps


def _round_up(x, m):
    return (x + m - 1) // m * m


# ------------------------------ Pallas kernels ------------------------------

def _matmul_stats_kernel(w_ref, p_ref, y_ref, sum_ref, sq_ref):
    # y = W @ patches on the MXU with f32 accumulation; stored as bf16.
    # Per-channel partial sums / sums-of-squares are accumulated in a resident
    # (Cp, LANE) output block across the pixel-tile ("arbitrary") grid axis.
    @pl.when(pl.program_id(1) == 0)
    def _():
        sum_ref[...] = jnp.zeros_like(sum_ref)
        sq_ref[...] = jnp.zeros_like(sq_ref)

    y = jnp.dot(w_ref[...], p_ref[...], preferred_element_type=jnp.float32)
    y_ref[...] = y.astype(y_ref.dtype)

    # Stats from the f32 accumulator. Invariant: padded rows/lanes of y are
    # exactly zero (no bias on this path, zero-padded weight & patch columns),
    # so no masking is needed. Do NOT reintroduce bias before this point.
    n = y.shape[1] // LANE
    s = y[:, 0:LANE]
    q = s * s
    for t in range(1, n):
        blk = y[:, t * LANE:(t + 1) * LANE]
        s = s + blk
        q = q + blk * blk
    sum_ref[...] += s
    sq_ref[...] += q


def _matmul_bias_kernel(w_ref, p_ref, bias_ref, o_ref):
    # is_last path: transposed conv + bias only (no BN / PReLU).
    o_ref[...] = (
        jnp.dot(w_ref[...], p_ref[...], preferred_element_type=jnp.float32)
        + bias_ref[...]
    )


def _bn_prelu_kernel(y_ref, scale_ref, shift_ref, alpha_ref, o_ref):
    # Fused BatchNorm affine + PReLU; scale/shift are per-channel (Cp, 1).
    z = y_ref[...].astype(jnp.float32) * scale_ref[...] + shift_ref[...]
    alpha = alpha_ref[0, 0]
    o_ref[...] = jnp.where(z > 0, z, alpha * z)


# --------------------------------- Wrapper ----------------------------------

def trans_conv_block(x, weight, bias, gamma, beta, alpha,
                     stride=(2, 1), causal=True, is_last=False):
    """Forward of TransConvBlock (padding=0, output_padding=0)."""
    B, Cin, H, W = x.shape
    Cin_w, Cout, kh, kw = weight.shape
    assert Cin == Cin_w
    sh, sw = stride

    H_out = (H - 1) * sh + kh
    W_out = (W - 1) * sw + kw
    W_keep = W_out - 1 if causal else W_out       # causal: drop last time frame

    M_b = H_out * W_keep                          # output pixels per batch image
    M = B * M_b                                   # true pixel count (for stats)
    K = Cin * kh * kw                             # contraction size

    # ConvTranspose2d(padding=0, output_padding=0) == stride-1 conv of the
    # zero-dilated, (k-1)-padded input with the spatially flipped weight.
    # One fused lax.pad does dilation (interior) + edge padding; cast to bf16
    # first so the materialized im2col below is half the bytes.
    x_bf = x.astype(jnp.bfloat16)
    xp = lax.pad(x_bf, jnp.array(0, x_bf.dtype),
                 ((0, 0, 0), (0, 0, 0),
                  (kh - 1, kh - 1, sh - 1), (kw - 1, kw - 1, sw - 1)))

    # im2col directly in the (B, K, M_b) layout the kernels consume
    # (batch leading -> no big XLA transpose of the patch array).
    cols = [xp[:, :, a:a + H_out, c:c + W_keep]
            for a in range(kh) for c in range(kw)]
    pat = jnp.stack(cols, axis=2)                 # (B, Cin, kh*kw, H_out, W_keep)
    patches = pat.reshape(B, K, M_b)

    # Flipped weight -> (Cout, K), K order (Cin, kh, kw) matching the patches.
    wf = weight[:, :, ::-1, ::-1]                 # (Cin, Cout, kh, kw)
    w_t = jnp.transpose(wf, (1, 0, 2, 3)).reshape(Cout, K)

    # TPU padding: channels on sublanes, pixels on lanes.
    Cp = _round_up(Cout, 8)
    Kp = _round_up(K, 16)

    # Adaptive lane tile: as large as a ~6 MiB (double-buffered) patch tile
    # allows, capped at TM_CAP, never more than one tile past M_b.
    tm_budget = max(LANE, ((6 << 20) // (Kp * 2)) // LANE * LANE)
    TM = min(TM_CAP, tm_budget, _round_up(M_b, LANE))
    gm = pl.cdiv(M_b, TM)
    Mp_b = gm * TM

    p_pad = jnp.pad(patches, ((0, 0), (0, Kp - K), (0, Mp_b - M_b)))      # bf16
    w_pad = jnp.pad(w_t, ((0, Cp - Cout), (0, Kp - K))).astype(jnp.bfloat16)

    grid = (B, gm)
    w_spec = pl.BlockSpec((Cp, Kp), lambda b, i: (0, 0))
    p_spec = pl.BlockSpec((None, Kp, TM), lambda b, i: (b, 0, i))
    o_spec = pl.BlockSpec((None, Cp, TM), lambda b, i: (b, 0, i))
    vmem_cap = 32 * 1024 * 1024

    if is_last:
        bias_p = jnp.pad(bias, (0, Cp - Cout)).reshape(Cp, 1).astype(jnp.float32)
        out = pl.pallas_call(
            _matmul_bias_kernel,
            out_shape=jax.ShapeDtypeStruct((B, Cp, Mp_b), jnp.float32),
            grid=grid,
            in_specs=[w_spec, p_spec,
                      pl.BlockSpec((Cp, 1), lambda b, i: (0, 0))],
            out_specs=o_spec,
            compiler_params=pltpu.CompilerParams(
                dimension_semantics=("parallel", "parallel"),
                vmem_limit_bytes=vmem_cap),
        )(w_pad, p_pad, bias_p)
    else:
        # Bias dropped: cancelled exactly by BatchNorm's mean subtraction, and
        # dropping it keeps padded rows/lanes of y exactly zero, so the batch
        # statistics need no masking.
        y, psum, psq = pl.pallas_call(
            _matmul_stats_kernel,
            out_shape=(jax.ShapeDtypeStruct((B, Cp, Mp_b), jnp.bfloat16),
                       jax.ShapeDtypeStruct((B, Cp, LANE), jnp.float32),
                       jax.ShapeDtypeStruct((B, Cp, LANE), jnp.float32)),
            grid=grid,
            in_specs=[w_spec, p_spec],
            out_specs=(o_spec,
                       pl.BlockSpec((None, Cp, LANE), lambda b, i: (b, 0, 0)),
                       pl.BlockSpec((None, Cp, LANE), lambda b, i: (b, 0, 0))),
            compiler_params=pltpu.CompilerParams(
                dimension_semantics=("parallel", "arbitrary"),
                vmem_limit_bytes=vmem_cap),
        )(w_pad, p_pad)

        # Finish the per-channel batch statistics (tiny arrays, plain XLA).
        # TODO(synk): E[y^2]-E[y]^2 in f32 cancels badly if |mean| >> std;
        # switch to a shifted / Welford accumulation if strict parity needed.
        s = jnp.sum(psum, axis=(0, 2))
        sq = jnp.sum(psq, axis=(0, 2))
        mean = s / M
        var = jnp.maximum(sq / M - mean * mean, 0.0)   # biased var, BN training
        gamma_p = jnp.pad(gamma, (0, Cp - Cout))
        beta_p = jnp.pad(beta, (0, Cp - Cout))
        rstd = lax.rsqrt(var + EPS)
        scale = (gamma_p * rstd).reshape(Cp, 1).astype(jnp.float32)
        shift = (beta_p - mean * gamma_p * rstd).reshape(Cp, 1).astype(jnp.float32)
        alpha_arr = jnp.full((1, 1), alpha, jnp.float32)

        # Fused BatchNorm affine + PReLU (reads bf16 y, writes f32 output).
        out = pl.pallas_call(
            _bn_prelu_kernel,
            out_shape=jax.ShapeDtypeStruct((B, Cp, Mp_b), jnp.float32),
            grid=grid,
            in_specs=[pl.BlockSpec((None, Cp, TM), lambda b, i: (b, 0, i)),
                      pl.BlockSpec((Cp, 1), lambda b, i: (0, 0)),
                      pl.BlockSpec((Cp, 1), lambda b, i: (0, 0)),
                      pl.BlockSpec(memory_space=pltpu.MemorySpace.SMEM)],
            out_specs=pl.BlockSpec((None, Cp, TM), lambda b, i: (b, 0, i)),
            compiler_params=pltpu.CompilerParams(
                dimension_semantics=("parallel", "parallel"),
                vmem_limit_bytes=vmem_cap),
        )(y, scale, shift, alpha_arr)

    # Back to PyTorch NCHW: per-batch layout makes this a slice + reshape
    # (no transpose pass).
    return out[:, :Cout, :M_b].reshape(B, Cout, H_out, W_keep)


# ----------------------------- Pure-JAX reference ----------------------------

def reference(x, weight, bias, gamma, beta, alpha, stride=(2, 1), is_last=False):
    sh, sw = stride
    _, _, kh, kw = weight.shape
    w_conv = jnp.transpose(weight, (1, 0, 2, 3))[:, :, ::-1, ::-1]
    y = lax.conv_general_dilated(
        x, w_conv, window_strides=(1, 1),
        padding=((kh - 1, kh - 1), (kw - 1, kw - 1)),
        lhs_dilation=(sh, sw),
        dimension_numbers=("NCHW", "OIHW", "NCHW"))
    y = y + bias[None, :, None, None]
    y = y[:, :, :, :-1]                                 # causal trim
    if is_last:
        return y
    mean = y.mean(axis=(0, 2, 3), keepdims=True)
    var = y.var(axis=(0, 2, 3), keepdims=True)
    z = ((y - mean) * lax.rsqrt(var + EPS)
         * gamma[None, :, None, None] + beta[None, :, None, None])
    return jnp.where(z > 0, z, alpha * z)


if __name__ == "__main__":
    key = jax.random.PRNGKey(0)
    B, Cin, Cout, H, W = 2, 4, 8, 8, 16
    kh, kw = 5, 2

    kx, kwt = jax.random.split(key)
    x = jax.random.normal(kx, (B, Cin, H, W), jnp.float32)

    # Deterministic parameter init (shapes from the PyTorch module):
    # ConvTranspose2d weight (Cin, Cout, kh, kw) ~ xavier_uniform, bias zeros,
    # BatchNorm gamma=1 / beta=0, PReLU alpha=0.25.
    fan_in, fan_out = Cout * kh * kw, Cin * kh * kw
    bound = (6.0 / (fan_in + fan_out)) ** 0.5
    weight = jax.random.uniform(kwt, (Cin, Cout, kh, kw), jnp.float32, -bound, bound)
    bias = jnp.zeros((Cout,), jnp.float32)
    gamma = jnp.ones((Cout,), jnp.float32)
    beta = jnp.zeros((Cout,), jnp.float32)
    alpha = 0.25

    fwd = jax.jit(trans_conv_block, static_argnames=("stride", "causal", "is_last"))

    # Default path: conv-transpose -> causal trim -> BN(batch stats) -> PReLU.
    out = jax.block_until_ready(fwd(x, weight, bias, gamma, beta, alpha))
    ref = reference(x, weight, bias, gamma, beta, alpha)
    assert out.shape == (B, Cout, (H - 1) * 2 + kh, W), out.shape
    # Tolerance reflects bf16 matmul operands + the bf16 y intermediate.
    err = float(jnp.max(jnp.abs(out - ref)))
    assert jnp.allclose(out, ref, atol=2e-2, rtol=2e-2), err

    # is_last path: conv-transpose + bias, causal trim only.
    out_last = jax.block_until_ready(
        fwd(x, weight, bias, gamma, beta, alpha, is_last=True))
    ref_last = reference(x, weight, bias, gamma, beta, alpha, is_last=True)
    err_last = float(jnp.max(jnp.abs(out_last - ref_last)))
    assert jnp.allclose(out_last, ref_last, atol=2e-2, rtol=2e-2), err_last

    print("KERNEL_OK")
</pallas_src>

<mosaic_0001>
module attributes {stable_mosaic.version = 11 : i64} {
  func.func @_matmul_stats_kernel(%arg0: i32, %arg1: i32, %arg2: memref<8x48xbf16, #tpu.memory_space<vmem>>, %arg3: memref<1x48x384xbf16, #tpu.memory_space<vmem>>, %arg4: memref<1x8x384xbf16, #tpu.memory_space<vmem>>, %arg5: memref<1x8x128xf32, #tpu.memory_space<vmem>>, %arg6: memref<1x8x128xf32, #tpu.memory_space<vmem>>) attributes {dimension_semantics = [#tpu.dimension_semantics<parallel>, #tpu.dimension_semantics<arbitrary>], iteration_bounds = array<i64: 2, 1>, scalar_prefetch = 0 : i64, scratch_operands = 0 : i64, tpu.core_type = #tpu.core_type<tc>, window_params = [{pipeline_mode = #tpu.pipeline_mode<synchronous>, transform_indices = @transform_0, window_bounds = array<i64: 8, 48>}, {transform_indices = @transform_1, window_bounds = array<i64: 1, 48, 384>}, {transform_indices = @transform_2, window_bounds = array<i64: 1, 8, 384>}, {transform_indices = @transform_3, window_bounds = array<i64: 1, 8, 128>}, {transform_indices = @transform_4, window_bounds = array<i64: 1, 8, 128>}]} {
    %c0_i32 = arith.constant 0 : i32
    %0 = arith.cmpi eq, %arg1, %c0_i32 : i32
    %1 = arith.extui %0 : i1 to i32
    %c0_i32_0 = arith.constant 0 : i32
    %2 = arith.cmpi ne, %1, %c0_i32_0 : i32
    scf.if %2 {
      %cst_20 = arith.constant 0.000000e+00 : f32
      %33 = vector.broadcast %cst_20 : f32 to vector<8x128xf32>
      %c0_21 = arith.constant 0 : index
      %c0_22 = arith.constant 0 : index
      %c0_23 = arith.constant 0 : index
      %34 = vector.load %arg5[%c0_21, %c0_22, %c0_23] : memref<1x8x128xf32, #tpu.memory_space<vmem>>, vector<1x8x128xf32>
      %35 = vector.shape_cast %34 : vector<1x8x128xf32> to vector<8x128xf32>
      %36 = vector.shape_cast %33 : vector<8x128xf32> to vector<1x8x128xf32>
      tpu.vector_store %arg5[%c0_21, %c0_22, %c0_23], %36 {strides = array<i32>} : memref<1x8x128xf32, #tpu.memory_space<vmem>>, vector<1x8x128xf32>,
      %cst_24 = arith.constant 0.000000e+00 : f32
      %37 = vector.broadcast %cst_24 : f32 to vector<8x128xf32>
      %c0_25 = arith.constant 0 : index
      %c0_26 = arith.constant 0 : index
      %c0_27 = arith.constant 0 : index
      %38 = vector.load %arg6[%c0_25, %c0_26, %c0_27] : memref<1x8x128xf32, #tpu.memory_space<vmem>>, vector<1x8x128xf32>
      %39 = vector.shape_cast %38 : vector<1x8x128xf32> to vector<8x128xf32>
      %40 = vector.shape_cast %37 : vector<8x128xf32> to vector<1x8x128xf32>
      tpu.vector_store %arg6[%c0_25, %c0_26, %c0_27], %40 {strides = array<i32>} : memref<1x8x128xf32, #tpu.memory_space<vmem>>, vector<1x8x128xf32>,
    } else {
    }
    %c0 = arith.constant 0 : index
    %c0_1 = arith.constant 0 : index
    %3 = vector.load %arg2[%c0, %c0_1] : memref<8x48xbf16, #tpu.memory_space<vmem>>, vector<8x48xbf16>
    %c0_2 = arith.constant 0 : index
    %c0_3 = arith.constant 0 : index
    %c0_4 = arith.constant 0 : index
    %4 = vector.load %arg3[%c0_2, %c0_3, %c0_4] : memref<1x48x384xbf16, #tpu.memory_space<vmem>>, vector<1x48x384xbf16>
    %5 = vector.shape_cast %4 : vector<1x48x384xbf16> to vector<48x384xbf16>
    %cst = arith.constant dense<0.000000e+00> : vector<8x384xf32>
    %6 = tpu.matmul %3, %5, %cst {dimension_numbers = #tpu.dot_dimension_numbers<[1], [0], [0], [1], [0, 0, 1, 1], [], []>} : vector<8x48xbf16>, vector<48x384xbf16>, vector<8x384xf32> -> vector<8x384xf32>
    %7 = arith.truncf %6 : vector<8x384xf32> to vector<8x384xbf16>
    %c0_5 = arith.constant 0 : index
    %c0_6 = arith.constant 0 : index
    %c0_7 = arith.constant 0 : index
    %8 = vector.load %arg4[%c0_5, %c0_6, %c0_7] : memref<1x8x384xbf16, #tpu.memory_space<vmem>>, vector<1x8x384xbf16>
    %9 = vector.shape_cast %8 : vector<1x8x384xbf16> to vector<8x384xbf16>
    %10 = vector.shape_cast %7 : vector<8x384xbf16> to vector<1x8x384xbf16>
    tpu.vector_store %arg4[%c0_5, %c0_6, %c0_7], %10 {strides = array<i32>} : memref<1x8x384xbf16, #tpu.memory_space<vmem>>, vector<1x8x384xbf16>,
    %11 = vector.extract_strided_slice %6 {offsets = [0, 0], sizes = [8, 128], strides = [1, 1]} : vector<8x384xf32> to vector<8x128xf32>
    %12 = arith.mulf %11, %11 : vector<8x128xf32>
    %13 = vector.extract_strided_slice %6 {offsets = [0, 128], sizes = [8, 128], strides = [1, 1]} : vector<8x384xf32> to vector<8x128xf32>
    %14 = arith.addf %11, %13 : vector<8x128xf32>
    %15 = arith.mulf %13, %13 : vector<8x128xf32>
    %16 = arith.addf %12, %15 : vector<8x128xf32>
    %17 = vector.extract_strided_slice %6 {offsets = [0, 256], sizes = [8, 128], strides = [1, 1]} : vector<8x384xf32> to vector<8x128xf32>
    %18 = arith.addf %14, %17 : vector<8x128xf32>
    %19 = arith.mulf %17, %17 : vector<8x128xf32>
    %20 = arith.addf %16, %19 : vector<8x128xf32>
    %c0_8 = arith.constant 0 : index
    %c0_9 = arith.constant 0 : index
    %c0_10 = arith.constant 0 : index
    %21 = vector.load %arg5[%c0_8, %c0_9, %c0_10] : memref<1x8x128xf32, #tpu.memory_space<vmem>>, vector<1x8x128xf32>
    %22 = vector.shape_cast %21 : vector<1x8x128xf32> to vector<8x128xf32>
    %23 = arith.addf %22, %18 : vector<8x128xf32>
    %c0_11 = arith.constant 0 : index
    %c0_12 = arith.constant 0 : index
    %c0_13 = arith.constant 0 : index
    %24 = vector.load %arg5[%c0_11, %c0_12, %c0_13] : memref<1x8x128xf32, #tpu.memory_space<vmem>>, vector<1x8x128xf32>
    %25 = vector.shape_cast %24 : vector<1x8x128xf32> to vector<8x128xf32>
    %26 = vector.shape_cast %23 : vector<8x128xf32> to vector<1x8x128xf32>
    tpu.vector_store %arg5[%c0_11, %c0_12, %c0_13], %26 {strides = array<i32>} : memref<1x8x128xf32, #tpu.memory_space<vmem>>, vector<1x8x128xf32>,
    %c0_14 = arith.constant 0 : index
    %c0_15 = arith.constant 0 : index
    %c0_16 = arith.constant 0 : index
    %27 = vector.load %arg6[%c0_14, %c0_15, %c0_16] : memref<1x8x128xf32, #tpu.memory_space<vmem>>, vector<1x8x128xf32>
    %28 = vector.shape_cast %27 : vector<1x8x128xf32> to vector<8x128xf32>
    %29 = arith.addf %28, %20 : vector<8x128xf32>
    %c0_17 = arith.constant 0 : index
    %c0_18 = arith.constant 0 : index
    %c0_19 = arith.constant 0 : index
    %30 = vector.load %arg6[%c0_17, %c0_18, %c0_19] : memref<1x8x128xf32, #tpu.memory_space<vmem>>, vector<1x8x128xf32>
    %31 = vector.shape_cast %30 : vector<1x8x128xf32> to vector<8x128xf32>
    %32 = vector.shape_cast %29 : vector<8x128xf32> to vector<1x8x128xf32>
    tpu.vector_store %arg6[%c0_17, %c0_18, %c0_19], %32 {strides = array<i32>} : memref<1x8x128xf32, #tpu.memory_space<vmem>>, vector<1x8x128xf32>,
    return
  }
  func.func @transform_0(%arg0: i32, %arg1: i32) -> (i32, i32) {
    %c0_i32 = arith.constant 0 : i32
    %c0_i32_0 = arith.constant 0 : i32
    %c0_i32_1 = arith.constant 0 : i32
    return %c0_i32, %c0_i32_0 : i32, i32
  }
  func.func @transform_1(%arg0: i32, %arg1: i32) -> (i32, i32, i32) {
    %c0_i32 = arith.constant 0 : i32
    %c0_i32_0 = arith.constant 0 : i32
    return %arg0, %c0_i32, %arg1 : i32, i32, i32
  }
  func.func @transform_2(%arg0: i32, %arg1: i32) -> (i32, i32, i32) {
    %c0_i32 = arith.constant 0 : i32
    %c0_i32_0 = arith.constant 0 : i32
    return %arg0, %c0_i32, %arg1 : i32, i32, i32
  }
  func.func @transform_3(%arg0: i32, %arg1: i32) -> (i32, i32, i32) {
    %c0_i32 = arith.constant 0 : i32
    %c0_i32_0 = arith.constant 0 : i32
    %c0_i32_1 = arith.constant 0 : i32
    return %arg0, %c0_i32, %c0_i32_0 : i32, i32, i32
  }
  func.func @transform_4(%arg0: i32, %arg1: i32) -> (i32, i32, i32) {
    %c0_i32 = arith.constant 0 : i32
    %c0_i32_0 = arith.constant 0 : i32
    %c0_i32_1 = arith.constant 0 : i32
    return %arg0, %c0_i32, %c0_i32_0 : i32, i32, i32
  }
}

module attributes {stable_mosaic.version = 11 : i64} {
  func.func @_bn_prelu_kernel(%arg0: i32, %arg1: i32, %arg2: memref<1x8x384xbf16, #tpu.memory_space<vmem>>, %arg3: memref<8x1xf32, #tpu.memory_space<vmem>>, %arg4: memref<8x1xf32, #tpu.memory_space<vmem>>, %arg5: memref<1x1xf32, #tpu.memory_space<smem>>, %arg6: memref<1x8x384xf32, #tpu.memory_space<vmem>>) attributes {dimension_semantics = [#tpu.dimension_semantics<parallel>, #tpu.dimension_semantics<parallel>], iteration_bounds = array<i64: 2, 1>, scalar_prefetch = 0 : i64, scratch_operands = 0 : i64, tpu.core_type = #tpu.core_type<tc>, window_params = [{transform_indices = @transform_0, window_bounds = array<i64: 1, 8, 384>}, {pipeline_mode = #tpu.pipeline_mode<synchronous>, transform_indices = @transform_1, window_bounds = array<i64: 8, 1>}, {pipeline_mode = #tpu.pipeline_mode<synchronous>, transform_indices = @transform_2, window_bounds = array<i64: 8, 1>}, {transform_indices = @transform_3, window_bounds = array<i64: 1, 1>}, {transform_indices = @transform_4, window_bounds = array<i64: 1, 8, 384>}]} {
    %c0 = arith.constant 0 : index
    %c0_0 = arith.constant 0 : index
    %c0_1 = arith.constant 0 : index
    %0 = vector.load %arg2[%c0, %c0_0, %c0_1] : memref<1x8x384xbf16, #tpu.memory_space<vmem>>, vector<1x8x384xbf16>
    %1 = vector.shape_cast %0 : vector<1x8x384xbf16> to vector<8x384xbf16>
    %2 = arith.extf %1 : vector<8x384xbf16> to vector<8x384xf32>
    %c0_2 = arith.constant 0 : index
    %c0_3 = arith.constant 0 : index
    %3 = vector.load %arg3[%c0_2, %c0_3] : memref<8x1xf32, #tpu.memory_space<vmem>>, vector<8x1xf32>
    %4 = vector.broadcast %3 : vector<8x1xf32> to vector<8x384xf32>
    %5 = arith.mulf %2, %4 : vector<8x384xf32>
    %c0_4 = arith.constant 0 : index
    %c0_5 = arith.constant 0 : index
    %6 = vector.load %arg4[%c0_4, %c0_5] : memref<8x1xf32, #tpu.memory_space<vmem>>, vector<8x1xf32>
    %7 = vector.broadcast %6 : vector<8x1xf32> to vector<8x384xf32>
    %8 = arith.addf %5, %7 : vector<8x384xf32>
    %c0_6 = arith.constant 0 : index
    %c0_7 = arith.constant 0 : index
    %9 = memref.load %arg5[%c0_6, %c0_7] : memref<1x1xf32, #tpu.memory_space<smem>>
    %cst = arith.constant 0.000000e+00 : f32
    %10 = vector.broadcast %cst : f32 to vector<8x384xf32>
    %11 = arith.cmpf ogt, %8, %10 : vector<8x384xf32>
    %12 = vector.broadcast %9 : f32 to vector<8x384xf32>
    %13 = arith.mulf %12, %8 : vector<8x384xf32>
    %14 = arith.select %11, %8, %13 : vector<8x384xi1>, vector<8x384xf32>
    %c0_8 = arith.constant 0 : index
    %c0_9 = arith.constant 0 : index
    %c0_10 = arith.constant 0 : index
    %15 = vector.load %arg6[%c0_8, %c0_9, %c0_10] : memref<1x8x384xf32, #tpu.memory_space<vmem>>, vector<1x8x384xf32>
    %16 = vector.shape_cast %15 : vector<1x8x384xf32> to vector<8x384xf32>
    %17 = vector.shape_cast %14 : vector<8x384xf32> to vector<1x8x384xf32>
    tpu.vector_store %arg6[%c0_8, %c0_9, %c0_10], %17 {strides = array<i32>} : memref<1x8x384xf32, #tpu.memory_space<vmem>>, vector<1x8x384xf32>,
    return
  }
  func.func @transform_0(%arg0: i32, %arg1: i32) -> (i32, i32, i32) {
    %c0_i32 = arith.constant 0 : i32
    %c0_i32_0 = arith.constant 0 : i32
    return %arg0, %c0_i32, %arg1 : i32, i32, i32
  }
  func.func @transform_1(%arg0: i32, %arg1: i32) -> (i32, i32) {
    %c0_i32 = arith.constant 0 : i32
    %c0_i32_0 = arith.constant 0 : i32
    %c0_i32_1 = arith.constant 0 : i32
    return %c0_i32, %c0_i32_0 : i32, i32
  }
  func.func @transform_2(%arg0: i32, %arg1: i32) -> (i32, i32) {
    %c0_i32 = arith.constant 0 : i32
    %c0_i32_0 = arith.constant 0 : i32
    %c0_i32_1 = arith.constant 0 : i32
    return %c0_i32, %c0_i32_0 : i32, i32
  }
  func.func @transform_3(%arg0: i32, %arg1: i32) -> (i32, i32) {
    %c0_i32 = arith.constant 0 : i32
    %c0_i32_0 = arith.constant 0 : i32
    %c0_i32_1 = arith.constant 0 : i32
    return %c0_i32, %c0_i32_0 : i32, i32
  }
  func.func @transform_4(%arg0: i32, %arg1: i32) -> (i32, i32, i32) {
    %c0_i32 = arith.constant 0 : i32
    %c0_i32_0 = arith.constant 0 : i32
    return %arg0, %c0_i32, %arg1 : i32, i32, i32
  }
}

</mosaic_0001>

<bundles_post_ra>
// kernel: trans_conv_block.2
= control target key start
LH: loop header
LB: loop body
LE: loop exit
PB: predicated region body
PF: predicated region fallthrough
CT: control target
= control target key end

     0   :  { %s670_s15 = smov 0   ;;  %s672_s16 = smov 0   ;;  %s717_s0 = inlined_call_operand.vmem [shape: bf16[8,48], index: 0, kind: input, shape index: {}]   ;;  %s718_s1 = inlined_call_operand.vmem [shape: bf16[2,48,384], index: 1, kind: input, shape index: {}]   ;;  %s719_s2 = inlined_call_operand.vmem [shape: bf16[2,8,384], index: 2, kind: output, shape index: {0}]   ;;  %s720_s3 = inlined_call_operand.vmem [shape: f32[2,8,128], index: 3, kind: output, shape index: {1}]   ;;  %s721_s4 = inlined_call_operand.vmem [shape: f32[2,8,128], index: 4, kind: output, shape index: {2}]  }
   0x1   :  { %s674_s17 = smov 0  }
   0x2 LB: > { %s27_s18 = sadd.s32 1, %s639_s16  ;;  %p539_p0 = scmp.ge.s32.totalorder %s643_s17, 1  ;;  %s643_s17 = sphi %s674_s17, %s15_s17   ;;  %s639_s16 = sphi %s672_s16, %s723_s16   ;;  %s635_s15 = sphi %s670_s15, %s722_s15  }
   0x3   : > { %p29_p1 = scmp.ge.s32.totalorder %s27_s18, 2  ;;  %p188_p2 = scmp.lt.s32.totalorder %s643_s17, 3 }
   0x5   : > { %s725_s18 = smov (%p29_p1, %s27_s18), 0  ;;  %p189_p3 = pnand %p539_p0, %p188_p2 }
   0x6   : > { %p231_p4 = scmp.lt.s32.totalorder (!%p189_p3), %s635_s15, 1 }
   0x7   : > { %192 = sbr.rel (%p189_p3) target bundleno = 171 (0xab), region = 28 }
   0xc   : > { %s727_s15 = smov (!%p231_p4, %s635_s15), 1  ;;  %v265_v27 = vld [vmem:[%s717_s0] sm:$0xf]  ;;  %vm326_vm0 = vcmask 392192  }
   0xd   : > { %s594_s19 = smul.u32 72, %s727_s15  ;;  %s542_s29 = sshll.u32 %s727_s15, 3 }
   0xe   : > { %s595_s25 = smul.u32 12, %s727_s15  ;;  %s253_s6 = scalar_lea.vmem %s720_s3, %s542_s29 }
   0xf   : > { %s238_s22 = scalar_lea.vmem %s718_s1, %s594_s19  ;;  %s257_s9 = scalar_lea.vmem %s721_s4, %s542_s29 }
  0x10   : > { %v570_v0 = vld [vmem:[%s238_s22 + $0x30] sm:$0xf]  ;;  %v592_v1 = vld [vmem:[%s238_s22 + $0x38] sm:$0xf0]  ;;  %v591_v2 = vld [vmem:[%s238_s22 + $0x34] sm:$0xf]  ;;  %s248_s28 = scalar_lea.vmem %s719_s2, %s595_s25 }
  0x11   : > { %v571_v3 = vor.u32 %v592_v1, %v570_v0  ;;  %v572_v4 = vld [vmem:[%s238_s22 + $0x3c] sm:$0xf0]  ;;  %v578_v5 = vld [vmem:[%s238_s22 + $0x38] sm:$0xf]  ;;  %v593_v6 = vld [vmem:[%s238_s22 + $0x40] sm:$0xf0] }
  0x12   : > { %v575_v7 = vor.u32 %v591_v2, %v572_v4  ;;  %v579_v8 = vor.u32 %v593_v6, %v578_v5  ;;  %v558_v9 = vld [vmem:[%s238_s22 + $0x18] sm:$0xf]  ;;  %v589_v10 = vld [vmem:[%s238_s22 + $0x20] sm:$0xf0]  ;;  %v588_v11 = vld [vmem:[%s238_s22 + $0x1c] sm:$0xf] }
  0x13   : > { %335 = vmatpush.bf16.msra.mxu0 %v571_v3  ;;  %v559_v12 = vor.u32 %v589_v10, %v558_v9  ;;  %v560_v13 = vld [vmem:[%s238_s22 + $0x24] sm:$0xf0]  ;;  %v566_v14 = vld [vmem:[%s238_s22 + $0x20] sm:$0xf]  ;;  %v590_v15 = vld [vmem:[%s238_s22 + $0x28] sm:$0xf0] }
  0x14   : > { %348 = vmatpush.bf16.msra.mxu1 %v575_v7  ;;  %361 = vmatpush.bf16.msra.mxu2 %v579_v8  ;;  %v563_v16 = vor.u32 %v588_v11, %v560_v13  ;;  %v567_v17 = vor.u32 %v590_v15, %v566_v14  ;;  %v546_v18 = vld [vmem:[%s238_s22] sm:$0xf]  ;;  %v586_v19 = vld [vmem:[%s238_s22 + $0x8] sm:$0xf0]  ;;  %v585_v20 = vld [vmem:[%s238_s22 + $0x4] sm:$0xf] }
  0x15   : > { %v548_v21 = vld [vmem:[%s238_s22 + $0xc] sm:$0xf0]  ;;  %v554_v22 = vld [vmem:[%s238_s22 + $0x8] sm:$0xf]  ;;  %v587_v23 = vld [vmem:[%s238_s22 + $0x10] sm:$0xf0]  ;;  %v547_v24 = vor.u32 %v586_v19, %v546_v18 }
  0x16   : > { %v551_v25 = vor.u32 %v585_v20, %v548_v21  ;;  %v555_v26 = vor.u32 %v587_v23, %v554_v22 }
  0x17   : > { %336 = vmatpush.bf16.msra.mxu0 %v559_v12 }
  0x18   : > { %349 = vmatpush.bf16.msra.mxu1 %v563_v16  ;;  %362 = vmatpush.bf16.msra.mxu2 %v567_v17 }
  0x1b   : > { %337 = vmatpush.bf16.msra.mxu0 %v547_v24 }
  0x1c   : > { %350 = vmatpush.bf16.msra.mxu1 %v551_v25  ;;  %363 = vmatpush.bf16.msra.mxu2 %v555_v26 }
  0x1e   : > { %580 = vmatmul.msk.bf16.vlgmr.msra.gmra.mxu0 %vm326_vm0, %v265_v27 }
  0x1f   : > { %581 = vmatmul.msk.bf16.vlgmr.msra.gmra.mxu1 %vm326_vm0, %v265_v27  ;;  %582 = vmatmul.msk.bf16.vlgmr.msra.gmra.mxu2 %vm326_vm0, %v265_v27 }
  0x9b   : > { %v339_v28 = vpop.f32.mrf.mxu0 }
  0x9c   : > { %v352_v29 = vpop.f32.mrf.mxu1  ;;  %v373_v30 = vmul.f32 %v339_v28, %v339_v28 }
  0x9d   : > { %v369_v31 = vpack.c.bf16 %v352_v29, %v339_v28  ;;  %v375_v32 = vmul.f32 %v352_v29, %v352_v29  ;;  %v374_v33 = vadd.f32 %v352_v29, %v339_v28 }
  0x9f   : > { %371 = vst [vmem:[%s248_s28] sm:$0xff] %v369_v31  ;;  %v376_v34 = vadd.f32 %v375_v32, %v373_v30 }
  0xa2   : > { %v365_v35 = vpop.f32.mrf.mxu2 }
  0xa3   : > { %v370_v36 = vpack.c.bf16 %v365_v35, %v365_v35  ;;  %v377_v37 = vadd.f32 %v374_v33, %v365_v35  ;;  %v378_v38 = vmul.f32 %v365_v35, %v365_v35  ;;  %v341_v39 = vpop.f32.mrf.mxu0 }
  0xa4   : > { %v354_v40 = vpop.f32.mrf.mxu1 }
  0xa5   : > { %372 = vst [vmem:[%s248_s28 + $0x8] sm:$0xf] %v370_v36  ;;  %v379_v41 = vadd.f32 %v378_v38, %v376_v34 }
  0xa6   : > { %382 = vst [vmem:[%s253_s6] sm:$0xff] %v377_v37 }
  0xa7   : > { %385 = vst [vmem:[%s257_s9] sm:$0xff] %v379_v41 }
  0xaa   : > { %v367_v42 = vpop.f32.mrf.mxu2 }
  0xab PF: > { %s15_s17 = sadd.s32 1, %s643_s17   ;;  %s722_s15 = smov %s639_s16 }
  0xac   : > { %p12_p5 = scmp.ge.s32.totalorder %s15_s17, 4   ;;  %s723_s16 = smov %s725_s18 }
  0xae   :  { %14 = sbr.rel (!%p12_p5) target bundleno = 2 (0x2), region = 86 }

// kernel: trans_conv_block.3
= control target key start
LH: loop header
LB: loop body
LE: loop exit
PB: predicated region body
PF: predicated region fallthrough
CT: control target
= control target key end

     0   :  { %s452_s17 = smov 0   ;;  %s454_s18 = smov 0   ;;  %s491_s0 = inlined_call_operand.vmem [shape: bf16[2,8,384], index: 0, kind: input, shape index: {}]   ;;  %s492_s1 = inlined_call_operand.vmem [shape: f32[8,1], index: 1, kind: input, shape index: {}]   ;;  %s493_s2 = inlined_call_operand.vmem [shape: f32[8,1], index: 2, kind: input, shape index: {}]   ;;  %s494_s3 = inlined_call_operand.<no memory space> [shape: f32[1,1], index: 3, kind: input, shape index: {}]   ;;  %s495_s4 = inlined_call_operand.vmem [shape: f32[2,8,384], index: 4, kind: output, shape index: {}]  }
   0x1   :  { %9 = sst [smem:[#allocation2]] %s494_s3  ;;  %s456_s19 = smov 0  }
   0x2 LB: > { %s27_s3 = sadd.s32 1, %s417_s18  ;;  %p366_p0 = scmp.ge.s32.totalorder %s421_s19, 1  ;;  %s421_s19 = sphi %s456_s19, %s15_s19   ;;  %s417_s18 = sphi %s454_s18, %s497_s18   ;;  %s413_s17 = sphi %s452_s17, %s496_s17  }
   0x3   : > { %p29_p1 = scmp.ge.s32.totalorder %s27_s3, 2  ;;  %p184_p2 = scmp.lt.s32.totalorder %s421_s19, 3 }
   0x5   : > { %s499_s3 = smov (%p29_p1, %s27_s3), 0  ;;  %p185_p3 = pnand %p366_p0, %p184_p2 }
   0x6   : > { %p219_p4 = scmp.lt.s32.totalorder (!%p185_p3), %s413_s17, 1  ;;  %s261_s28 = sld [smem:[#allocation2]] (!%p185_p3) }
   0x7   : > { %188 = sbr.rel (%p185_p3) target bundleno = 145 (0x91), region = 36 }
   0xc   : > { %v243_v0 = vld [vmem:[%s492_s1] sm:$0xff]  ;;  %v423_v1 = vmov 0   ;;  %s501_s17 = smov (!%p219_p4, %s413_s17), 1  ;;  %v265_v12 = vstv %s261_s28 }
   0xd   : > { %398 = vset.pattern.permute.xlu0 %v423_v1  ;;  %v252_v2 = vld [vmem:[%s493_s2] sm:$0xff]  ;;  %s371_s24 = smul.u32 12, %s501_s17 }
   0xe   : > { %246 = vperm.xlu0 %398, %v243_v0   ;;  %s372_s29 = smul.u32 24, %s501_s17 }
   0xf   : > { %s226_s27 = scalar_lea.vmem %s491_s0, %s371_s24 }
  0x10   : > { %v238_v4 = vld [vmem:[%s226_s27] sm:$0xff]  ;;  %v239_v5 = vld [vmem:[%s226_s27 + $0x8] sm:$0xf]  ;;  %s236_s6 = scalar_lea.vmem %s495_s4, %s372_s29 }
  0x11   : > { %v240_v6 = vunpack.c.l.bf16 %v238_v4  ;;  %v241_v7 = vunpack.c.h.bf16 %v238_v4  ;;  %v242_v8 = vunpack.c.l.bf16 %v239_v5 }
  0x16   : > { %255 = vperm.xlu0 %398, %v252_v2  }
  0x80   : > { %v247_v3 = vpop.permute.xlu0 %246 }
  0x81   : > { %v249_v9 = vmul.f32 %v247_v3, %v240_v6  ;;  %v250_v10 = vmul.f32 %v247_v3, %v241_v7  ;;  %v251_v11 = vmul.f32 %v247_v3, %v242_v8 }
  0x88   : > { %v256_v13 = vpop.permute.xlu0 %255 }
  0x89   : > { %v258_v14 = vadd.f32 %v256_v13, %v249_v9  ;;  %v259_v15 = vadd.f32 %v256_v13, %v250_v10  ;;  %v260_v16 = vadd.f32 %v256_v13, %v251_v11 }
  0x8b   : > { %vm262_vm0 = vcmp.gt.f32.partialorder %v258_v14, 0.0  ;;  %vm263_vm1 = vcmp.gt.f32.partialorder %v259_v15, 0.0  ;;  %vm264_vm2 = vcmp.gt.f32.partialorder %v260_v16, 0.0  ;;  %v266_v17 = vmul.f32 %v265_v12, %v258_v14 }
  0x8c   : > { %v267_v18 = vmul.f32 %v265_v12, %v259_v15  ;;  %v268_v19 = vmul.f32 %v265_v12, %v260_v16 }
  0x8d   : > { %v269_v20 = vsel %vm262_vm0, %v258_v14, %v266_v17 }
  0x8e   : > { %v270_v21 = vsel %vm263_vm1, %v259_v15, %v267_v18  ;;  %v271_v22 = vsel %vm264_vm2, %v260_v16, %v268_v19  ;;  %272 = vst [vmem:[%s236_s6] sm:$0xff] %v269_v20 }
  0x8f   : > { %273 = vst [vmem:[%s236_s6 + $0x8] sm:$0xff] %v270_v21 }
  0x90   : > { %274 = vst [vmem:[%s236_s6 + $0x10] sm:$0xff] %v271_v22 }
  0x91 PF: > { %s15_s19 = sadd.s32 1, %s421_s19   ;;  %s496_s17 = smov %s417_s18 }
  0x92   : > { %p12_p5 = scmp.ge.s32.totalorder %s15_s19, 4   ;;  %s497_s18 = smov %s499_s3 }
  0x94   :  { %14 = sbr.rel (!%p12_p5) target bundleno = 2 (0x2), region = 66 }

</bundles_post_ra>
